<compile_context>
chip_gen: v5e
topology: v5e:2x2
jax: 0.10.0
libtpu: 0.0.40
codegen_flags: <defaults>
</compile_context>

<pallas_src>
import functools

import jax
import jax.numpy as jnp
import numpy as np
from jax.experimental import pallas as pl
from jax.experimental.pallas import tpu as pltpu


@functools.lru_cache(maxsize=None)
def _avg_matrix(seq_len: int, kernel_size: int):
    """Banded (L, L) averaging matrix with replicate padding baked in.

    Row t holds count(t, s) / kernel_size where count(t, s) is the number of
    window offsets d in [-pad, pad] with clamp(t + d, 0, L-1) == s.  Counts are
    exact integers; a single 1/k scale keeps the f32 rounding to one step.
    """
    pad = (kernel_size - 1) // 2
    idx = np.arange(seq_len)
    w = np.zeros((seq_len, seq_len), dtype=np.float32)
    for d in range(-pad, pad + 1):
        src = np.clip(idx + d, 0, seq_len - 1)
        w[idx, src] += 1.0
    w /= np.float32(kernel_size)
    return jnp.asarray(w)


def _decomp_matmul_kernel(w_ref, x_ref, res_ref, mean_ref):
    """One (L, lane_tile) slab: mean = W @ x on the MXU; res = x - mean."""
    xf = x_ref[...].astype(jnp.float32)
    mean = jnp.dot(
        w_ref[...],
        xf,
        preferred_element_type=jnp.float32,
        precision=jax.lax.Precision.HIGHEST,   # exact-f32 contraction
    )
    mean_ref[...] = mean.astype(mean_ref.dtype)
    res_ref[...] = (xf - mean).astype(res_ref.dtype)


def _decomp_roll_kernel(x_ref, res_ref, mean_ref, *, kernel_size):
    """Long-sequence fallback: XLU rolls + replicate-padding edge fixes."""
    x = x_ref[...].astype(jnp.float32)
    L, _ = x.shape
    pad = (kernel_size - 1) // 2

    row = jax.lax.broadcasted_iota(jnp.int32, (L, 1), 0)   # (L, 1) row index
    first = x[0:1, :]                                      # (1, lanes)
    last = x[L - 1:L, :]                                   # (1, lanes)

    acc = x                                                # d = 0 window term
    for d in range(1, pad + 1):
        # x[(t + d) % L], then replicate-pad past the end of the sequence.
        fwd = pltpu.roll(x, L - d, axis=0)
        acc = acc + jnp.where(row >= L - d, last, fwd)
        # x[(t - d) % L], then replicate-pad before the start.
        bwd = pltpu.roll(x, d, axis=0)
        acc = acc + jnp.where(row < d, first, bwd)

    mean = acc * jnp.float32(1.0 / kernel_size)
    mean_ref[...] = mean.astype(mean_ref.dtype)
    res_ref[...] = (x - mean).astype(res_ref.dtype)


def _pick_lane_tile(n_lanes, seq_len, itemsize, max_block_bytes, want_steps):
    """Largest 128-multiple divisor of n_lanes whose (seq_len, tile) block fits
    the byte budget, preferring tiles that yield at least `want_steps` lane
    tiles (so a B == 1 problem still exposes >= 2 parallel grid steps)."""
    divisors = [t for t in range(128, n_lanes + 1, 128) if n_lanes % t == 0]
    fitting = [t for t in divisors if seq_len * t * itemsize <= max_block_bytes]
    if not fitting:
        # 128 lanes is the hard floor; budget cannot be met for this seq_len.
        fitting = [128]
    preferred = [t for t in fitting if n_lanes // t >= want_steps]
    return max(preferred) if preferred else max(fitting)


def series_decomp(x, kernel_size, *, max_w_bytes=4 * 1024 * 1024,
                  max_block_bytes=2 * 1024 * 1024):
    """x: (B, L, C). Returns (res, moving_mean), matching the PyTorch module."""
    if kernel_size < 1 or kernel_size % 2 != 1:
        raise ValueError("kernel_size must be a positive odd integer.")
    B, L, C = x.shape
    pad = (kernel_size - 1) // 2

    use_matmul = L * L * 4 <= max_w_bytes
    if not use_matmul and pad >= L:
        raise ValueError("roll fallback requires seq_len > (kernel_size - 1) // 2")

    itemsize = jnp.dtype(x.dtype).itemsize
    if C % 128 == 0:
        want_steps = 2 if B == 1 else 1
        ct = _pick_lane_tile(C, L, itemsize, max_block_bytes, want_steps)
    else:
        # Ragged / small channel count: one full-width (L, C) slab per batch.
        # Masked partial stores are far cheaper than the wrapper-side HBM
        # transposes they replace (3 extra full read+write passes).
        ct = C
    grid = (B, C // ct)

    block = pl.BlockSpec((None, L, ct), lambda b, c: (b, 0, c))
    out_shape = [jax.ShapeDtypeStruct((B, L, C), x.dtype)] * 2
    compiler_params = pltpu.CompilerParams(
        dimension_semantics=("parallel", "parallel"),
        vmem_limit_bytes=32 * 1024 * 1024,
    )

    if use_matmul:
        w = _avg_matrix(L, kernel_size)
        # Constant index_map -> W is fetched once and stays VMEM-resident.
        w_spec = pl.BlockSpec((L, L), lambda b, c: (0, 0))
        res, mean = pl.pallas_call(
            _decomp_matmul_kernel,
            grid=grid,
            in_specs=[w_spec, block],
            out_specs=[block, block],
            out_shape=out_shape,
            compiler_params=compiler_params,
        )(w, x)
    else:
        kernel = functools.partial(_decomp_roll_kernel, kernel_size=kernel_size)
        res, mean = pl.pallas_call(
            kernel,
            grid=grid,
            in_specs=[block],
            out_specs=[block, block],
            out_shape=out_shape,
            compiler_params=compiler_params,
        )(x)
    return res, mean


def _reference(x, kernel_size):
    """Pure-JAX reference mirroring the PyTorch forward."""
    pad = (kernel_size - 1) // 2
    front = jnp.repeat(x[:, :1, :], pad, axis=1)
    end = jnp.repeat(x[:, -1:, :], pad, axis=1)
    xp = jnp.concatenate([front, x, end], axis=1)
    L = x.shape[1]
    ma = jnp.stack(
        [xp[:, t:t + kernel_size, :].mean(axis=1) for t in range(L)], axis=1
    )
    return x - ma, ma


if __name__ == "__main__":
    key = jax.random.PRNGKey(0)
    k1, k2 = jax.random.split(key)

    # 1) Small / ragged channel count (raw multivariate series): full (L, C)
    #    slab per batch, MXU-matmul path, no wrapper transposes.
    B, L, C, ks = 2, 32, 8, 7
    x_small = jax.random.normal(k1, (B, L, C), dtype=jnp.float32)
    res, mean = series_decomp(x_small, ks)
    jax.block_until_ready((res, mean))
    res_ref, mean_ref = _reference(x_small, ks)
    assert jnp.allclose(res, res_ref, atol=1e-5, rtol=1e-5)
    assert jnp.allclose(mean, mean_ref, atol=1e-5, rtol=1e-5)

    # 2) Lane-dense channels (d_model-sized): tiled (L, ct) blocks, MXU path.
    B2, L2, C2, ks2 = 2, 32, 256, 25
    x_wide = jax.random.normal(k2, (B2, L2, C2), dtype=jnp.float32)
    res2, mean2 = series_decomp(x_wide, ks2)
    jax.block_until_ready((res2, mean2))
    res2_ref, mean2_ref = _reference(x_wide, ks2)
    assert jnp.allclose(res2, res2_ref, atol=1e-5, rtol=1e-5)
    assert jnp.allclose(mean2, mean2_ref, atol=1e-5, rtol=1e-5)

    # 3) Force the long-sequence roll fallback and verify it as well.
    res3, mean3 = series_decomp(x_small, ks, max_w_bytes=0)
    jax.block_until_ready((res3, mean3))
    assert jnp.allclose(res3, res_ref, atol=1e-5, rtol=1e-5)
    assert jnp.allclose(mean3, mean_ref, atol=1e-5, rtol=1e-5)

    print("KERNEL_OK")
</pallas_src>

<mosaic_0001>
module attributes {stable_mosaic.version = 11 : i64} {
  func.func @_decomp_matmul_kernel(%arg0: i32, %arg1: i32, %arg2: memref<32x32xf32, #tpu.memory_space<vmem>>, %arg3: memref<1x32x8xf32, #tpu.memory_space<vmem>>, %arg4: memref<1x32x8xf32, #tpu.memory_space<vmem>>, %arg5: memref<1x32x8xf32, #tpu.memory_space<vmem>>) attributes {dimension_semantics = [#tpu.dimension_semantics<parallel>, #tpu.dimension_semantics<parallel>], iteration_bounds = array<i64: 2, 1>, scalar_prefetch = 0 : i64, scratch_operands = 0 : i64, tpu.core_type = #tpu.core_type<tc>, window_params = [{pipeline_mode = #tpu.pipeline_mode<synchronous>, transform_indices = @transform_0, window_bounds = array<i64: 32, 32>}, {transform_indices = @transform_1, window_bounds = array<i64: 1, 32, 8>}, {transform_indices = @transform_2, window_bounds = array<i64: 1, 32, 8>}, {transform_indices = @transform_3, window_bounds = array<i64: 1, 32, 8>}]} {
    %c0 = arith.constant 0 : index
    %c0_0 = arith.constant 0 : index
    %c0_1 = arith.constant 0 : index
    %0 = vector.load %arg3[%c0, %c0_0, %c0_1] : memref<1x32x8xf32, #tpu.memory_space<vmem>>, vector<1x32x8xf32>
    %1 = vector.shape_cast %0 : vector<1x32x8xf32> to vector<32x8xf32>
    %c0_2 = arith.constant 0 : index
    %c0_3 = arith.constant 0 : index
    %2 = vector.load %arg2[%c0_2, %c0_3] : memref<32x32xf32, #tpu.memory_space<vmem>>, vector<32x32xf32>
    %cst = arith.constant dense<0.000000e+00> : vector<32x8xf32>
    %3 = tpu.matmul %2, %1, %cst {dimension_numbers = #tpu.dot_dimension_numbers<[1], [0], [0], [1], [0, 0, 1, 1], [], []>, precision = #tpu.contract_precision<fp32>} : vector<32x32xf32>, vector<32x8xf32>, vector<32x8xf32> -> vector<32x8xf32>
    %c0_4 = arith.constant 0 : index
    %c0_5 = arith.constant 0 : index
    %c0_6 = arith.constant 0 : index
    %4 = vector.load %arg5[%c0_4, %c0_5, %c0_6] : memref<1x32x8xf32, #tpu.memory_space<vmem>>, vector<1x32x8xf32>
    %5 = vector.shape_cast %4 : vector<1x32x8xf32> to vector<32x8xf32>
    %6 = vector.shape_cast %3 : vector<32x8xf32> to vector<1x32x8xf32>
    tpu.vector_store %arg5[%c0_4, %c0_5, %c0_6], %6 {strides = array<i32>} : memref<1x32x8xf32, #tpu.memory_space<vmem>>, vector<1x32x8xf32>,
    %7 = arith.subf %1, %3 : vector<32x8xf32>
    %c0_7 = arith.constant 0 : index
    %c0_8 = arith.constant 0 : index
    %c0_9 = arith.constant 0 : index
    %8 = vector.load %arg4[%c0_7, %c0_8, %c0_9] : memref<1x32x8xf32, #tpu.memory_space<vmem>>, vector<1x32x8xf32>
    %9 = vector.shape_cast %8 : vector<1x32x8xf32> to vector<32x8xf32>
    %10 = vector.shape_cast %7 : vector<32x8xf32> to vector<1x32x8xf32>
    tpu.vector_store %arg4[%c0_7, %c0_8, %c0_9], %10 {strides = array<i32>} : memref<1x32x8xf32, #tpu.memory_space<vmem>>, vector<1x32x8xf32>,
    return
  }
  func.func @transform_0(%arg0: i32, %arg1: i32) -> (i32, i32) {
    %c0_i32 = arith.constant 0 : i32
    %c0_i32_0 = arith.constant 0 : i32
    %c0_i32_1 = arith.constant 0 : i32
    return %c0_i32, %c0_i32_0 : i32, i32
  }
  func.func @transform_1(%arg0: i32, %arg1: i32) -> (i32, i32, i32) {
    %c0_i32 = arith.constant 0 : i32
    %c0_i32_0 = arith.constant 0 : i32
    return %arg0, %c0_i32, %arg1 : i32, i32, i32
  }
  func.func @transform_2(%arg0: i32, %arg1: i32) -> (i32, i32, i32) {
    %c0_i32 = arith.constant 0 : i32
    %c0_i32_0 = arith.constant 0 : i32
    return %arg0, %c0_i32, %arg1 : i32, i32, i32
  }
  func.func @transform_3(%arg0: i32, %arg1: i32) -> (i32, i32, i32) {
    %c0_i32 = arith.constant 0 : i32
    %c0_i32_0 = arith.constant 0 : i32
    return %arg0, %c0_i32, %arg1 : i32, i32, i32
  }
}

</mosaic_0001>

<bundles_post_ra>
// kernel: tpu_custom_call.1
= control target key start
LH: loop header
LB: loop body
LE: loop exit
PB: predicated region body
PF: predicated region fallthrough
CT: control target
= control target key end

     0   :  { %s757_s12 = smov 0   ;;  %s759_s13 = smov 0   ;;  %s934_s0 = inlined_call_operand.vmem [shape: f32[32,32], index: 0, kind: input, shape index: {}]   ;;  %s935_s1 = inlined_call_operand.vmem [shape: f32[2,32,8], index: 1, kind: input, shape index: {}]   ;;  %s936_s2 = inlined_call_operand.vmem [shape: f32[2,32,8], index: 2, kind: output, shape index: {0}]   ;;  %s937_s3 = inlined_call_operand.vmem [shape: f32[2,32,8], index: 3, kind: output, shape index: {1}]  }
   0x1   :  { %s761_s14 = smov 0  }
   0x2 LB: > { %s26_s15 = sadd.s32 1, %s731_s13  ;;  %p669_p0 = scmp.ge.s32.totalorder %s735_s14, 1  ;;  %s735_s14 = sphi %s761_s14, %s14_s14   ;;  %s731_s13 = sphi %s759_s13, %s939_s13   ;;  %s727_s12 = sphi %s757_s12, %s938_s12  }
   0x3   : > { %p28_p1 = scmp.ge.s32.totalorder %s26_s15, 2  ;;  %p161_p2 = scmp.lt.s32.totalorder %s735_s14, 3 }
   0x5   : > { %s941_s15 = smov (%p28_p1, %s26_s15), 0  ;;  %p162_p3 = pnand %p669_p0, %p161_p2 }
   0x6   : > { %p199_p4 = scmp.lt.s32.totalorder (!%p162_p3), %s727_s12, 1 }
   0x7   : > { %165 = sbr.rel (%p162_p3) target bundleno = 214 (0xd6), region = 28 }
   0xc   : > { %v229_v0 = vld [vmem:[%s934_s0 + $0x10] sm:$0xff]  ;;  %vm231_vm0 = vcmask 261120   ;;  %v230_v1 = vld [vmem:[%s934_s0 + $0x18] sm:$0xff]  ;;  %v227_v2 = vld [vmem:[%s934_s0] sm:$0xff]  ;;  %s943_s12 = smov (!%p199_p4, %s727_s12), 1  ;;  %vm522_vm1 = vcmask 64512  }
   0xd   : > { %v239_v3 = vsel %vm231_vm0, %v229_v0, 0  ;;  %v242_v4 = vsel %vm231_vm0, %v230_v1, 0  ;;  %v233_v5 = vsel %vm231_vm0, %v227_v2, 0  ;;  %v228_v6 = vld [vmem:[%s934_s0 + $0x8] sm:$0xff]  ;;  %s791_s24 = sshll.u32 %s943_s12, 5 }
   0xe   : > { %v787_v7 = vand.u32 4294901760, %v239_v3  ;;  %v789_v8 = vand.u32 4294901760, %v233_v5  ;;  %v236_v9 = vsel %vm231_vm0, %v228_v6, 0  ;;  %v796_v11 = vand.u32 4294901760, %v242_v4  ;;  %s206_s27 = scalar_lea.vmem %s935_s1, %s791_s24  ;;  %s897_s30 = scalar_lea.vmem %s937_s3, %s791_s24 }
   0xf   : > { %v805_v13 = vld [vmem:[%s206_s27 + $0x18] sm:$0xff]  ;;  %v807_v14 = vld [vmem:[%s206_s27 + $0x10] sm:$0xff]  ;;  %v809_v15 = vld [vmem:[%s206_s27 + $0x8] sm:$0xff]  ;;  %v813_v18 = vand.u32 4294901760, %v236_v9  ;;  %s903_s6 = scalar_lea.vmem %s936_s2, %s791_s24 }
  0x10   : > { %v794_v10 = vsub.f32 %v239_v3, %v787_v7  ;;  %v799_v12 = vsub.f32 %v233_v5, %v789_v8  ;;  %v816_v19 = vand.u32 4294901760, %v805_v13  ;;  %v819_v20 = vand.u32 4294901760, %v807_v14  ;;  %v824_v22 = vld [vmem:[%s206_s27] sm:$0xff] }
  0x11   : > { %v822_v21 = vand.u32 4294901760, %v809_v15  ;;  %v827_v23 = vand.u32 4294901760, %v824_v22  ;;  %v833_v25 = vsub.f32 %v242_v4, %v796_v11  ;;  %v849_v31 = vsub.f32 %v236_v9, %v813_v18 }
  0x12   : > { %v282_v16 = vand.u32 4294901760, %v794_v10  ;;  %v266_v17 = vand.u32 4294901760, %v799_v12  ;;  %681 = vmatpush.msra.mxu2 %v816_v19  ;;  %v310_v27 = vsub.f32 %v805_v13, %v816_v19  ;;  %v316_v28 = vsub.f32 %v807_v14, %v819_v20  ;;  %257 = vmatpush.msra.mxu0 %v816_v19 }
  0x13   : > { %v322_v29 = vsub.f32 %v809_v15, %v822_v21  ;;  %v328_v30 = vsub.f32 %v824_v22, %v827_v23  ;;  %v290_v37 = vand.u32 4294901760, %v833_v25  ;;  %v274_v42 = vand.u32 4294901760, %v849_v31 }
  0x14   : > { %v283_v24 = vsub.f32 %v794_v10, %v282_v16  ;;  %v267_v26 = vsub.f32 %v799_v12, %v266_v17  ;;  %682 = vmatpush.msra.mxu2 %v819_v20  ;;  %v311_v32 = vand.u32 4294901760, %v310_v27  ;;  %v317_v33 = vand.u32 4294901760, %v316_v28  ;;  %259 = vmatpush.msra.mxu0 %v819_v20 }
  0x15   : > { %v323_v34 = vand.u32 4294901760, %v322_v29  ;;  %v329_v36 = vand.u32 4294901760, %v328_v30  ;;  %v291_v46 = vsub.f32 %v833_v25, %v290_v37  ;;  %v275_v48 = vsub.f32 %v849_v31, %v274_v42 }
  0x16   : > { %v284_v35 = vand.u32 4294901760, %v283_v24  ;;  %v268_v38 = vand.u32 4294901760, %v267_v26  ;;  %683 = vmatpush.msra.mxu2 %v822_v21  ;;  %v312_v39 = vsub.f32 %v310_v27, %v311_v32  ;;  %v318_v40 = vsub.f32 %v316_v28, %v317_v33  ;;  %261 = vmatpush.msra.mxu0 %v822_v21 }
  0x17   : > { %v324_v41 = vsub.f32 %v322_v29, %v323_v34  ;;  %v330_v45 = vsub.f32 %v328_v30, %v329_v36  ;;  %v292_v50 = vand.u32 4294901760, %v291_v46  ;;  %v276_v51 = vand.u32 4294901760, %v275_v48 }
  0x18   : > { %684 = vmatpush.msra.mxu2 %v827_v23  ;;  %v313_v43 = vand.u32 4294901760, %v312_v39  ;;  %v319_v44 = vand.u32 4294901760, %v318_v40  ;;  %263 = vmatpush.msra.mxu0 %v827_v23 }
  0x19   : > { %285 = vmatmul.f32.vlgmr.msra.gmra.mxu2 %v284_v35  ;;  %269 = vmatmul.f32.vlgmr.msra.gmra.mxu0 %v268_v38  ;;  %v325_v47 = vand.u32 4294901760, %v324_v41  ;;  %v331_v49 = vand.u32 4294901760, %v330_v45 }
  0x1a   : > { %685 = vmatpush.msra.mxu3 %v313_v43  ;;  %364 = vmatpush.msrb.mxu2 %v310_v27 }
  0x1b   : > { %314 = vmatpush.msra.mxu1 %v313_v43  ;;  %455 = vmatpush.msrb.mxu0 %v311_v32 }
  0x1c   : > { %686 = vmatpush.msra.mxu3 %v319_v44  ;;  %367 = vmatpush.msrb.mxu2 %v316_v28 }
  0x1d   : > { %320 = vmatpush.msra.mxu1 %v319_v44  ;;  %459 = vmatpush.msrb.mxu0 %v317_v33 }
  0x1e   : > { %687 = vmatpush.msra.mxu3 %v325_v47  ;;  %370 = vmatpush.msrb.mxu2 %v322_v29 }
  0x1f   : > { %326 = vmatpush.msra.mxu1 %v325_v47  ;;  %463 = vmatpush.msrb.mxu0 %v323_v34 }
  0x20   : > { %688 = vmatpush.msra.mxu3 %v331_v49  ;;  %373 = vmatpush.msrb.mxu2 %v328_v30 }
  0x21   : > { %293 = vmatmul.f32.gmra.mxu2 %v292_v50  ;;  %342 = vmatmul.f32.vlgmr.msra.gmra.mxu3 %v787_v7 }
  0x22   : > { %408 = vmatpush.msrb.mxu3 %v816_v19  ;;  %332 = vmatpush.msra.mxu1 %v331_v49 }
  0x23   : > { %334 = vmatmul.f32.vlgmr.msra.gmra.mxu1 %v789_v8  ;;  %277 = vmatmul.f32.gmra.mxu0 %v276_v51 }
  0x24   : > { %410 = vmatpush.msrb.mxu3 %v819_v20  ;;  %498 = vmatpush.msrb.mxu1 %v816_v19 }
  0x25   : > { %467 = vmatpush.msrb.mxu0 %v329_v36 }
  0x26   : > { %412 = vmatpush.msrb.mxu3 %v822_v21  ;;  %500 = vmatpush.msrb.mxu1 %v819_v20 }
  0x28   : > { %414 = vmatpush.msrb.mxu3 %v827_v23  ;;  %502 = vmatpush.msrb.mxu1 %v822_v21 }
  0x29   : > { %346 = vmatmul.f32.gmra.mxu3 %v796_v11  ;;  %376 = vmatmul.f32.vlgmr.msrb.gmra.mxu2 %v799_v12 }
  0x2a   : > { %504 = vmatpush.msrb.mxu1 %v827_v23 }
  0x2b   : > { %338 = vmatmul.f32.gmra.mxu1 %v813_v18  ;;  %469 = vmatmul.f32.vlgmr.msrb.gmra.mxu0 %v789_v8 }
  0x31   : > { %381 = vmatmul.f32.gmra.mxu2 %v849_v31  ;;  %418 = vmatmul.f32.vlgmr.msrb.gmra.mxu3 %v266_v17 }
  0x33   : > { %506 = vmatmul.f32.vlgmr.msrb.gmra.mxu1 %v789_v8  ;;  %473 = vmatmul.f32.gmra.mxu0 %v813_v18 }
  0x39   : > { %386 = vmatmul.f32.gmra.mxu2 %v794_v10  ;;  %424 = vmatmul.f32.gmra.mxu3 %v274_v42 }
  0x3b   : > { %510 = vmatmul.f32.gmra.mxu1 %v813_v18  ;;  %477 = vmatmul.f32.gmra.mxu0 %v787_v7 }
  0x41   : > { %391 = vmatmul.f32.gmra.mxu2 %v833_v25  ;;  %430 = vmatmul.f32.gmra.mxu3 %v282_v16 }
  0x43   : > { %514 = vmatmul.f32.gmra.mxu1 %v787_v7  ;;  %481 = vmatmul.f32.gmra.mxu0 %v796_v11 }
  0x49   : > { %436 = vmatmul.f32.gmra.mxu3 %v290_v37 }
  0x4b   : > { %518 = vmatmul.f32.gmra.mxu1 %v796_v11 }
  0x96   : > { %v270_v52 = vpop.f32.mrf.mxu0 }
  0x9c   : > { %v286_v53 = vpop.f32.mrf.mxu2 }
  0xa0   : > { %v335_v54 = vpop.f32.mrf.mxu1  ;;  %v278_v55 = vpop.f32.mrf.mxu0 }
  0xa1   : > { %v336_v63 = vadd.f32 %v335_v54, %v270_v52 }
  0xa4   : > { %v294_v56 = vpop.f32.mrf.mxu2  ;;  %v343_v57 = vpop.f32.mrf.mxu3 }
  0xa5   : > { %v344_v18 = vadd.f32 %v343_v57, %v286_v53 }
  0xa8   : > { %v339_v58 = vpop.f32.mrf.mxu1  ;;  %v470_v61 = vpop.f32.mrf.mxu0 }
  0xa9   : > { %v340_v6 = vadd.f32 %v339_v58, %v278_v55 }
  0xac   : > { %v347_v59 = vpop.f32.mrf.mxu3  ;;  %v377_v60 = vpop.f32.mrf.mxu2 }
  0xad   : > { %v378_v0 = vadd.f32 %v377_v60, %v336_v63  ;;  %v348_v28 = vadd.f32 %v347_v59, %v294_v56 }
  0xb0   : > { %v507_v62 = vpop.f32.mrf.mxu1  ;;  %v474_v5 = vpop.f32.mrf.mxu0 }
  0xb4   : > { %v382_v1 = vpop.f32.mrf.mxu2  ;;  %v419_v2 = vpop.f32.mrf.mxu3 }
  0xb5   : > { %v420_v3 = vadd.f32 %v419_v2, %v378_v0  ;;  %v383_v9 = vadd.f32 %v382_v1, %v340_v6 }
  0xb7   : > { %v471_v4 = vadd.f32 %v470_v61, %v420_v3 }
  0xb8   : > { %v511_v8 = vpop.f32.mrf.mxu1  ;;  %v478_v20 = vpop.f32.mrf.mxu0 }
  0xb9   : > { %v508_v7 = vadd.f32 %v507_v62, %v471_v4 }
  0xbb   : > { %523 = vst.msk [vmem:[%s897_s30] sm:$0xff] %vm522_vm1, %v508_v7  ;;  %v527_v10 = vsub.f32 %v824_v22, %v508_v7 }
  0xbc   : > { %v425_v11 = vpop.f32.mrf.mxu3  ;;  %v387_v16 = vpop.f32.mrf.mxu2 }
  0xbd   : > { %531 = vst.msk [vmem:[%s903_s6] sm:$0xff] %vm522_vm1, %v527_v10  ;;  %v426_v12 = vadd.f32 %v425_v11, %v383_v9  ;;  %v388_v21 = vadd.f32 %v387_v16, %v344_v18 }
  0xbf   : > { %v475_v17 = vadd.f32 %v474_v5, %v426_v12 }
  0xc0   : > { %v515_v25 = vpop.f32.mrf.mxu1  ;;  %v482_v33 = vpop.f32.mrf.mxu0 }
  0xc1   : > { %v512_v19 = vadd.f32 %v511_v8, %v475_v17 }
  0xc3   : > { %524 = vst.msk [vmem:[%s897_s30 + $0x8] sm:$0xff] %vm522_vm1, %v512_v19  ;;  %v528_v23 = vsub.f32 %v809_v15, %v512_v19 }
  0xc4   : > { %v431_v24 = vpop.f32.mrf.mxu3  ;;  %v392_v27 = vpop.f32.mrf.mxu2 }
  0xc5   : > { %532 = vst.msk [vmem:[%s903_s6 + $0x8] sm:$0xff] %vm522_vm1, %v528_v23  ;;  %v432_v22 = vadd.f32 %v431_v24, %v388_v21  ;;  %v393_v30 = vadd.f32 %v392_v27, %v348_v28 }
  0xc7   : > { %v479_v26 = vadd.f32 %v478_v20, %v432_v22 }
  0xc8   : > { %v519_v34 = vpop.f32.mrf.mxu1 }
  0xc9   : > { %v516_v29 = vadd.f32 %v515_v25, %v479_v26 }
  0xcb   : > { %525 = vst.msk [vmem:[%s897_s30 + $0x10] sm:$0xff] %vm522_vm1, %v516_v29  ;;  %v529_v31 = vsub.f32 %v807_v14, %v516_v29 }
  0xcc   : > { %v437_v32 = vpop.f32.mrf.mxu3 }
  0xcd   : > { %533 = vst.msk [vmem:[%s903_s6 + $0x10] sm:$0xff] %vm522_vm1, %v529_v31  ;;  %v438_v15 = vadd.f32 %v437_v32, %v393_v30 }
  0xcf   : > { %v483_v35 = vadd.f32 %v482_v33, %v438_v15 }
  0xd1   : > { %v520_v36 = vadd.f32 %v519_v34, %v483_v35 }
  0xd3   : > { %526 = vst.msk [vmem:[%s897_s30 + $0x18] sm:$0xff] %vm522_vm1, %v520_v36  ;;  %v530_v37 = vsub.f32 %v805_v13, %v520_v36 }
  0xd5   : > { %534 = vst.msk [vmem:[%s903_s6 + $0x18] sm:$0xff] %vm522_vm1, %v530_v37 }
  0xd6 PF: > { %s14_s14 = sadd.s32 1, %s735_s14   ;;  %s938_s12 = smov %s731_s13 }
  0xd7   : > { %p11_p5 = scmp.ge.s32.totalorder %s14_s14, 4   ;;  %s939_s13 = smov %s941_s15 }
  0xd9   :  { %13 = sbr.rel (!%p11_p5) target bundleno = 2 (0x2), region = 70 }

</bundles_post_ra>
